<compile_context>
chip_gen: v7x
topology: tpu7x:2x2x1
jax: 0.10.0
libtpu: 0.0.40
codegen_flags: <defaults>
</compile_context>

<pallas_src>
import functools
import numpy as np
import jax
import jax.numpy as jnp
from jax.experimental import pallas as pl
from jax.experimental.pallas import tpu as pltpu


def _output_paddings(idim):
    if idim % 4 == 0:
        return 0, 1
    elif idim % 4 == 1:
        return 1, 0
    elif idim % 4 == 2:
        return 1, 1
    else:
        return 0, 0


def _pick_batch_block(B):
    """Batch elements per grid step; keep >=2 grid steps for megacore/v7x."""
    if B < 2:
        return 1
    cap = max(1, min(8, B // 2))
    for bb in range(cap, 0, -1):
        if B % bb == 0:
            return bb
    return 1


# --------------------------------- kernel -----------------------------------

def _fused_upsampling_kernel(x_ref, wl_ref, bl_ref, w1_ref, br1_ref,
                             w2_ref, br2_ref, out_ref, y_s,
                             *, Bb, T, N1, N2):
    f32 = jnp.float32
    bf16 = jnp.bfloat16

    # Hoisted parameter reads (shared across the per-batch loop).
    wl = wl_ref[...]      # (D, F*C)      bf16
    bl = bl_ref[...]      # (1, F*C)      f32
    w1 = w1_ref[...]      # (F*C, 3*N1)   bf16   [tap0 | tap1 | tap2]
    br1 = br1_ref[...]    # (1, N1)       f32
    w2 = w2_ref[...]      # (N1, 3*N2)    bf16   [tap0 | tap1 | tap2]
    br2 = br2_ref[...]    # (1, N2)       f32

    # Linear + ReLU, then fused 3-tap ConvT1 matmul over all Bb*T rows at once.
    x = x_ref[...]                                                # (Bb*T, D) bf16
    h = jnp.dot(x, wl, preferred_element_type=f32) + bl           # (Bb*T, F*C) f32
    h = jnp.maximum(h, 0.0)
    u = jnp.dot(h.astype(bf16), w1, preferred_element_type=f32)   # (Bb*T, 3*N1) f32

    H1 = 2 * T + 1   # time length after ConvT1

    for b in range(Bb):  # small static loop (Bb <= 8)
        ub = u[b * T:(b + 1) * T, :]
        u0 = ub[:, 0:N1]            # tap ky=0
        u1 = ub[:, N1:2 * N1]       # tap ky=1
        u2 = ub[:, 2 * N1:3 * N1]   # tap ky=2

        # ConvT1 time assembly via direct ref writes (no sublane concat):
        #   scratch rows 0..T   = even ConvT1 rows  (tap0[a] + tap2[a-1] + bias)
        #   scratch rows T+1..2T = odd ConvT1 rows  (tap1[a] + bias)
        y_s[b, 0:T, :] = u0 + br1
        y_s[b, T:T + 1, :] = br1
        y_s[b, 1:T + 1, :] = y_s[b, 1:T + 1, :] + u2
        y_s[b, T + 1:H1, :] = u1 + br1

        # ReLU + single fused 3-tap ConvT2 matmul over all 2T+1 rows.
        yb = jnp.maximum(y_s[b], 0.0)                                  # (2T+1, N1)
        v = jnp.dot(yb.astype(bf16), w2, preferred_element_type=f32)   # (2T+1, 3*N2)
        ve = v[0:T + 1, :]     # contributions from even ConvT1 rows
        vo = v[T + 1:H1, :]    # contributions from odd  ConvT1 rows

        # Parity-packed output: out[b, m, p*N2:(p+1)*N2] holds final row 4m+p.
        out_ref[b, 0:T + 1, 0:N2] = ve[:, 0:N2] + br2                      # p=0: tap0(even m)
        out_ref[b, 1:T + 1, 0:N2] = (
            out_ref[b, 1:T + 1, 0:N2] + vo[:, 2 * N2:3 * N2])             #      + tap2(odd m-1)
        out_ref[b, 0:T + 1, N2:2 * N2] = ve[:, N2:2 * N2] + br2            # p=1: tap1(even m)
        out_ref[b, 0:T + 1, 2 * N2:3 * N2] = ve[:, 2 * N2:3 * N2] + br2    # p=2: tap2(even m)
        out_ref[b, 0:T, 2 * N2:3 * N2] = (
            out_ref[b, 0:T, 2 * N2:3 * N2] + vo[:, 0:N2])                  #      + tap0(odd m)
        out_ref[b, 0:T, 3 * N2:4 * N2] = vo[:, N2:2 * N2] + br2            # p=3: tap1(odd m)
        out_ref[b, T:T + 1, 3 * N2:4 * N2] = jnp.zeros((1, N2), f32)       # pad row (dropped)


# --------------------------------- wrapper ----------------------------------

def conv2d_upsampling_forward(x, w_lin, b_lin, w1, b1, w2, b2, idim, odim,
                              *, batch_block=None):
    B, T, D = x.shape
    assert D == odim
    C = odim
    F = ((idim - 1) // 2 - 1) // 2
    o1, o2 = _output_paddings(idim)
    W1out = 2 * F + 1 + o1          # freq width after ConvT1
    W2out = 2 * W1out + 1 + o2      # freq width after ConvT2 == idim
    N1 = W1out * C
    N2 = W2out
    Tout = 4 * T + 3

    # ---- host-side parameter setup (done once) ----
    wl = np.asarray(w_lin, np.float32)
    bl = np.asarray(b_lin, np.float32)
    w1n = np.asarray(w1, np.float32)
    b1n = np.asarray(b1, np.float32)
    w2n = np.asarray(w2, np.float32)
    b2n = np.asarray(b2, np.float32)

    # Linear weight permuted so columns come out freq-major: col = f*C + c.
    Wp = wl.T.reshape(odim, C, F).transpose(0, 2, 1).reshape(odim, F * C)
    bp = bl.reshape(C, F).T.reshape(1, F * C)

    # ConvT1 frequency band matrices (one per time tap) concatenated on lanes.
    M1 = np.zeros((3, F * C, N1), np.float32)
    for ky in range(3):
        for kx in range(3):
            for f in range(F):
                wo = 2 * f + kx
                M1[ky, f * C:(f + 1) * C, wo * C:(wo + 1) * C] += w1n[:, :, ky, kx]
    W1cat = np.concatenate([M1[0], M1[1], M1[2]], axis=1)      # (F*C, 3*N1)
    br1 = np.tile(b1n, W1out).reshape(1, N1).astype(np.float32)

    # ConvT2 frequency band matrices concatenated on lanes.
    M2 = np.zeros((3, N1, N2), np.float32)
    for ky in range(3):
        for kx in range(3):
            for wf in range(W1out):
                wo = 2 * wf + kx
                M2[ky, wf * C:(wf + 1) * C, wo] += w2n[:, 0, ky, kx]
    W2cat = np.concatenate([M2[0], M2[1], M2[2]], axis=1)      # (N1, 3*N2)
    br2 = np.full((1, N2), float(b2n[0]), np.float32)

    f32 = jnp.float32
    bf16 = jnp.bfloat16

    Bb = batch_block if batch_block is not None else _pick_batch_block(B)
    assert B % Bb == 0
    grid = (B // Bb,)

    x2 = x.astype(bf16).reshape(B * T, D)   # batches contiguous along rows

    kernel = functools.partial(_fused_upsampling_kernel, Bb=Bb, T=T, N1=N1, N2=N2)

    out = pl.pallas_call(
        kernel,
        out_shape=jax.ShapeDtypeStruct((B, T + 1, 4 * N2), f32),
        grid=grid,
        in_specs=[
            pl.BlockSpec((Bb * T, D), lambda g: (g, 0)),
            pl.BlockSpec((D, F * C), lambda g: (0, 0)),
            pl.BlockSpec((1, F * C), lambda g: (0, 0)),
            pl.BlockSpec((F * C, 3 * N1), lambda g: (0, 0)),
            pl.BlockSpec((1, N1), lambda g: (0, 0)),
            pl.BlockSpec((N1, 3 * N2), lambda g: (0, 0)),
            pl.BlockSpec((1, N2), lambda g: (0, 0)),
        ],
        out_specs=pl.BlockSpec((Bb, T + 1, 4 * N2), lambda g: (g, 0, 0)),
        scratch_shapes=[pltpu.VMEM((Bb, 2 * T + 1, N1), f32)],
        compiler_params=pltpu.CompilerParams(
            dimension_semantics=("parallel",),
            vmem_limit_bytes=32 * 1024 * 1024),
    )(x2,
      jnp.asarray(Wp, bf16), jnp.asarray(bp, f32),
      jnp.asarray(W1cat, bf16), jnp.asarray(br1, f32),
      jnp.asarray(W2cat, bf16), jnp.asarray(br2, f32))

    # Parity-packed (B, T+1, 4*N2) -> (B, 4T+3, idim): pure layout plumbing.
    y = out.reshape(B, 4 * (T + 1), N2)[:, :Tout, :]
    return y


# ------------------------------ numpy reference ------------------------------

def _convt_np(x, w, b, op):
    B, Ci, H, W = x.shape
    Co = w.shape[1]
    Ho = (H - 1) * 2 + 3 + op[0]
    Wo = (W - 1) * 2 + 3 + op[1]
    out = np.zeros((B, Co, Ho, Wo), np.float32) + b.reshape(1, Co, 1, 1)
    for ky in range(3):
        for kx in range(3):
            contrib = np.einsum('bihw,io->bohw', x, w[:, :, ky, kx])
            out[:, :, ky:ky + 2 * H:2, kx:kx + 2 * W:2] += contrib
    return out


def _reference_forward(x, w_lin, b_lin, w1, b1, w2, b2, idim, odim):
    x = np.asarray(x, np.float32)
    w_lin, b_lin = np.asarray(w_lin, np.float32), np.asarray(b_lin, np.float32)
    w1, b1 = np.asarray(w1, np.float32), np.asarray(b1, np.float32)
    w2, b2 = np.asarray(w2, np.float32), np.asarray(b2, np.float32)
    F = ((idim - 1) // 2 - 1) // 2
    o1, o2 = _output_paddings(idim)
    B, T, _ = x.shape
    h = x @ w_lin.T + b_lin
    h = h.reshape(B, T, odim, F).transpose(0, 2, 1, 3)      # NCHW
    y = np.maximum(h, 0.0)
    y = _convt_np(y, w1, b1, (0, o1))
    y = np.maximum(y, 0.0)
    y = _convt_np(y, w2, b2, (0, o2))
    return y[:, 0]                                           # squeeze channel


# ----------------------------------- main ------------------------------------

if __name__ == "__main__":
    idim, odim = 16, 8
    B, T = 2, 8
    F = ((idim - 1) // 2 - 1) // 2

    key = jax.random.PRNGKey(0)
    ks = jax.random.split(key, 8)
    w_lin = jax.random.normal(ks[0], (odim * F, odim), jnp.float32) * 0.2
    b_lin = jax.random.normal(ks[1], (odim * F,), jnp.float32) * 0.1
    w1 = jax.random.normal(ks[2], (odim, odim, 3, 3), jnp.float32) * 0.2
    b1 = jax.random.normal(ks[3], (odim,), jnp.float32) * 0.1
    w2 = jax.random.normal(ks[4], (odim, 1, 3, 3), jnp.float32) * 0.2
    b2 = jax.random.normal(ks[5], (1,), jnp.float32) * 0.1
    x = jax.random.normal(ks[6], (B, T, odim), jnp.float32)

    # Primary check (B=2 -> one batch element per grid step, grid parallel).
    out = conv2d_upsampling_forward(x, w_lin, b_lin, w1, b1, w2, b2, idim, odim)
    out = jax.block_until_ready(out)
    ref = _reference_forward(x, w_lin, b_lin, w1, b1, w2, b2, idim, odim)
    assert out.shape == ref.shape, (out.shape, ref.shape)
    # bf16 matmuls with f32 accumulation vs f32 reference.
    np.testing.assert_allclose(np.asarray(out), ref, rtol=5e-2, atol=3e-2)

    # Secondary check: larger batch exercises the batch-blocked (Bb>1) path.
    B2 = 8
    x8 = jax.random.normal(ks[7], (B2, T, odim), jnp.float32)
    out8 = jax.block_until_ready(
        conv2d_upsampling_forward(x8, w_lin, b_lin, w1, b1, w2, b2, idim, odim))
    ref8 = _reference_forward(x8, w_lin, b_lin, w1, b1, w2, b2, idim, odim)
    assert out8.shape == ref8.shape, (out8.shape, ref8.shape)
    np.testing.assert_allclose(np.asarray(out8), ref8, rtol=5e-2, atol=3e-2)

    print("KERNEL_OK")
</pallas_src>

<mosaic_0001>
module attributes {stable_mosaic.version = 11 : i64} {
  func.func @_fused_upsampling_kernel(%arg0: i32, %arg1: memref<8x8xbf16, #tpu.memory_space<vmem>>, %arg2: memref<8x24xbf16, #tpu.memory_space<vmem>>, %arg3: memref<1x24xf32, #tpu.memory_space<vmem>>, %arg4: memref<24x168xbf16, #tpu.memory_space<vmem>>, %arg5: memref<1x56xf32, #tpu.memory_space<vmem>>, %arg6: memref<56x48xbf16, #tpu.memory_space<vmem>>, %arg7: memref<1x16xf32, #tpu.memory_space<vmem>>, %arg8: memref<1x9x64xf32, #tpu.memory_space<vmem>>, %arg9: memref<1x17x56xf32, #tpu.memory_space<vmem>>) attributes {dimension_semantics = [#tpu.dimension_semantics<parallel>], iteration_bounds = array<i64: 2>, scalar_prefetch = 0 : i64, scratch_operands = 1 : i64, tpu.core_type = #tpu.core_type<tc>, window_params = [{transform_indices = @transform_0, window_bounds = array<i64: 8, 8>}, {pipeline_mode = #tpu.pipeline_mode<synchronous>, transform_indices = @transform_1, window_bounds = array<i64: 8, 24>}, {pipeline_mode = #tpu.pipeline_mode<synchronous>, transform_indices = @transform_2, window_bounds = array<i64: 1, 24>}, {pipeline_mode = #tpu.pipeline_mode<synchronous>, transform_indices = @transform_3, window_bounds = array<i64: 24, 168>}, {pipeline_mode = #tpu.pipeline_mode<synchronous>, transform_indices = @transform_4, window_bounds = array<i64: 1, 56>}, {pipeline_mode = #tpu.pipeline_mode<synchronous>, transform_indices = @transform_5, window_bounds = array<i64: 56, 48>}, {pipeline_mode = #tpu.pipeline_mode<synchronous>, transform_indices = @transform_6, window_bounds = array<i64: 1, 16>}, {transform_indices = @transform_7, window_bounds = array<i64: 1, 9, 64>}]} {
    %c0 = arith.constant 0 : index
    %c0_0 = arith.constant 0 : index
    %0 = vector.load %arg2[%c0, %c0_0] : memref<8x24xbf16, #tpu.memory_space<vmem>>, vector<8x24xbf16>
    %c0_1 = arith.constant 0 : index
    %c0_2 = arith.constant 0 : index
    %1 = vector.load %arg3[%c0_1, %c0_2] : memref<1x24xf32, #tpu.memory_space<vmem>>, vector<1x24xf32>
    %c0_3 = arith.constant 0 : index
    %c0_4 = arith.constant 0 : index
    %2 = vector.load %arg4[%c0_3, %c0_4] : memref<24x168xbf16, #tpu.memory_space<vmem>>, vector<24x168xbf16>
    %c0_5 = arith.constant 0 : index
    %c0_6 = arith.constant 0 : index
    %3 = vector.load %arg5[%c0_5, %c0_6] : memref<1x56xf32, #tpu.memory_space<vmem>>, vector<1x56xf32>
    %c0_7 = arith.constant 0 : index
    %c0_8 = arith.constant 0 : index
    %4 = vector.load %arg6[%c0_7, %c0_8] : memref<56x48xbf16, #tpu.memory_space<vmem>>, vector<56x48xbf16>
    %c0_9 = arith.constant 0 : index
    %c0_10 = arith.constant 0 : index
    %5 = vector.load %arg7[%c0_9, %c0_10] : memref<1x16xf32, #tpu.memory_space<vmem>>, vector<1x16xf32>
    %c0_11 = arith.constant 0 : index
    %c0_12 = arith.constant 0 : index
    %6 = vector.load %arg1[%c0_11, %c0_12] : memref<8x8xbf16, #tpu.memory_space<vmem>>, vector<8x8xbf16>
    %cst = arith.constant dense<0.000000e+00> : vector<8x24xf32>
    %7 = tpu.matmul %6, %0, %cst {dimension_numbers = #tpu.dot_dimension_numbers<[1], [0], [0], [1], [0, 0, 1, 1], [], []>} : vector<8x8xbf16>, vector<8x24xbf16>, vector<8x24xf32> -> vector<8x24xf32>
    %8 = vector.broadcast %1 : vector<1x24xf32> to vector<8x24xf32>
    %9 = arith.addf %7, %8 : vector<8x24xf32>
    %cst_13 = arith.constant 0.000000e+00 : f32
    %10 = vector.broadcast %cst_13 : f32 to vector<8x24xf32>
    %11 = arith.maximumf %9, %10 : vector<8x24xf32>
    %12 = arith.truncf %11 : vector<8x24xf32> to vector<8x24xbf16>
    %cst_14 = arith.constant dense<0.000000e+00> : vector<8x168xf32>
    %13 = tpu.matmul %12, %2, %cst_14 {dimension_numbers = #tpu.dot_dimension_numbers<[1], [0], [0], [1], [0, 0, 1, 1], [], []>} : vector<8x24xbf16>, vector<24x168xbf16>, vector<8x168xf32> -> vector<8x168xf32>
    %14 = vector.extract_strided_slice %13 {offsets = [0, 0], sizes = [8, 56], strides = [1, 1]} : vector<8x168xf32> to vector<8x56xf32>
    %15 = vector.extract_strided_slice %13 {offsets = [0, 56], sizes = [8, 56], strides = [1, 1]} : vector<8x168xf32> to vector<8x56xf32>
    %16 = vector.extract_strided_slice %13 {offsets = [0, 112], sizes = [8, 56], strides = [1, 1]} : vector<8x168xf32> to vector<8x56xf32>
    %17 = vector.broadcast %3 : vector<1x56xf32> to vector<8x56xf32>
    %18 = arith.addf %14, %17 : vector<8x56xf32>
    %c0_15 = arith.constant 0 : index
    %c0_16 = arith.constant 0 : index
    %c0_17 = arith.constant 0 : index
    %19 = vector.load %arg9[%c0_15, %c0_16, %c0_17] : memref<1x17x56xf32, #tpu.memory_space<vmem>>, vector<1x8x56xf32>
    %20 = vector.shape_cast %19 : vector<1x8x56xf32> to vector<8x56xf32>
    %21 = vector.shape_cast %18 : vector<8x56xf32> to vector<1x8x56xf32>
    tpu.vector_store %arg9[%c0_15, %c0_16, %c0_17], %21 {strides = array<i32>} : memref<1x17x56xf32, #tpu.memory_space<vmem>>, vector<1x8x56xf32>,
    %c0_18 = arith.constant 0 : index
    %c8 = arith.constant 8 : index
    %c0_19 = arith.constant 0 : index
    %22 = vector.load %arg9[%c0_18, %c8, %c0_19] : memref<1x17x56xf32, #tpu.memory_space<vmem>>, vector<1x1x56xf32>
    %23 = vector.shape_cast %22 : vector<1x1x56xf32> to vector<1x56xf32>
    %24 = vector.shape_cast %3 : vector<1x56xf32> to vector<1x1x56xf32>
    tpu.vector_store %arg9[%c0_18, %c8, %c0_19], %24 {strides = array<i32>} : memref<1x17x56xf32, #tpu.memory_space<vmem>>, vector<1x1x56xf32>,
    %c0_20 = arith.constant 0 : index
    %c1 = arith.constant 1 : index
    %c0_21 = arith.constant 0 : index
    %25 = vector.load %arg9[%c0_20, %c1, %c0_21] : memref<1x17x56xf32, #tpu.memory_space<vmem>>, vector<1x8x56xf32>
    %26 = vector.shape_cast %25 : vector<1x8x56xf32> to vector<8x56xf32>
    %27 = arith.addf %26, %16 : vector<8x56xf32>
    %c0_22 = arith.constant 0 : index
    %c1_23 = arith.constant 1 : index
    %c0_24 = arith.constant 0 : index
    %28 = vector.load %arg9[%c0_22, %c1_23, %c0_24] : memref<1x17x56xf32, #tpu.memory_space<vmem>>, vector<1x8x56xf32>
    %29 = vector.shape_cast %28 : vector<1x8x56xf32> to vector<8x56xf32>
    %30 = vector.shape_cast %27 : vector<8x56xf32> to vector<1x8x56xf32>
    tpu.vector_store %arg9[%c0_22, %c1_23, %c0_24], %30 {strides = array<i32>} : memref<1x17x56xf32, #tpu.memory_space<vmem>>, vector<1x8x56xf32>,
    %31 = vector.broadcast %3 : vector<1x56xf32> to vector<8x56xf32>
    %32 = arith.addf %15, %31 : vector<8x56xf32>
    %c0_25 = arith.constant 0 : index
    %c9 = arith.constant 9 : index
    %c0_26 = arith.constant 0 : index
    %33 = vector.load %arg9[%c0_25, %c9, %c0_26] : memref<1x17x56xf32, #tpu.memory_space<vmem>>, vector<1x8x56xf32>
    %34 = vector.shape_cast %33 : vector<1x8x56xf32> to vector<8x56xf32>
    %35 = vector.shape_cast %32 : vector<8x56xf32> to vector<1x8x56xf32>
    tpu.vector_store %arg9[%c0_25, %c9, %c0_26], %35 {strides = array<i32>} : memref<1x17x56xf32, #tpu.memory_space<vmem>>, vector<1x8x56xf32>,
    %c0_27 = arith.constant 0 : index
    %c0_28 = arith.constant 0 : index
    %c0_29 = arith.constant 0 : index
    %36 = vector.load %arg9[%c0_27, %c0_28, %c0_29] : memref<1x17x56xf32, #tpu.memory_space<vmem>>, vector<1x17x56xf32>
    %37 = vector.shape_cast %36 : vector<1x17x56xf32> to vector<17x56xf32>
    %cst_30 = arith.constant 0.000000e+00 : f32
    %38 = vector.broadcast %cst_30 : f32 to vector<17x56xf32>
    %39 = arith.maximumf %37, %38 : vector<17x56xf32>
    %40 = arith.truncf %39 : vector<17x56xf32> to vector<17x56xbf16>
    %cst_31 = arith.constant dense<0.000000e+00> : vector<17x48xf32>
    %41 = tpu.matmul %40, %4, %cst_31 {dimension_numbers = #tpu.dot_dimension_numbers<[1], [0], [0], [1], [0, 0, 1, 1], [], []>} : vector<17x56xbf16>, vector<56x48xbf16>, vector<17x48xf32> -> vector<17x48xf32>
    %42 = vector.extract_strided_slice %41 {offsets = [0, 0], sizes = [9, 48], strides = [1, 1]} : vector<17x48xf32> to vector<9x48xf32>
    %43 = vector.extract_strided_slice %41 {offsets = [9, 0], sizes = [8, 48], strides = [1, 1]} : vector<17x48xf32> to vector<8x48xf32>
    %44 = vector.extract_strided_slice %42 {offsets = [0, 0], sizes = [9, 16], strides = [1, 1]} : vector<9x48xf32> to vector<9x16xf32>
    %45 = vector.broadcast %5 : vector<1x16xf32> to vector<9x16xf32>
    %46 = arith.addf %44, %45 : vector<9x16xf32>
    %c0_32 = arith.constant 0 : index
    %c0_33 = arith.constant 0 : index
    %c0_34 = arith.constant 0 : index
    %47 = vector.load %arg8[%c0_32, %c0_33, %c0_34] : memref<1x9x64xf32, #tpu.memory_space<vmem>>, vector<1x9x16xf32>
    %48 = vector.shape_cast %47 : vector<1x9x16xf32> to vector<9x16xf32>
    %49 = vector.shape_cast %46 : vector<9x16xf32> to vector<1x9x16xf32>
    tpu.vector_store %arg8[%c0_32, %c0_33, %c0_34], %49 {strides = array<i32>} : memref<1x9x64xf32, #tpu.memory_space<vmem>>, vector<1x9x16xf32>,
    %c0_35 = arith.constant 0 : index
    %c1_36 = arith.constant 1 : index
    %c0_37 = arith.constant 0 : index
    %50 = vector.load %arg8[%c0_35, %c1_36, %c0_37] : memref<1x9x64xf32, #tpu.memory_space<vmem>>, vector<1x8x16xf32>
    %51 = vector.shape_cast %50 : vector<1x8x16xf32> to vector<8x16xf32>
    %52 = vector.extract_strided_slice %43 {offsets = [0, 32], sizes = [8, 16], strides = [1, 1]} : vector<8x48xf32> to vector<8x16xf32>
    %53 = arith.addf %51, %52 : vector<8x16xf32>
    %c0_38 = arith.constant 0 : index
    %c1_39 = arith.constant 1 : index
    %c0_40 = arith.constant 0 : index
    %54 = vector.load %arg8[%c0_38, %c1_39, %c0_40] : memref<1x9x64xf32, #tpu.memory_space<vmem>>, vector<1x8x16xf32>
    %55 = vector.shape_cast %54 : vector<1x8x16xf32> to vector<8x16xf32>
    %56 = vector.shape_cast %53 : vector<8x16xf32> to vector<1x8x16xf32>
    tpu.vector_store %arg8[%c0_38, %c1_39, %c0_40], %56 {strides = array<i32>} : memref<1x9x64xf32, #tpu.memory_space<vmem>>, vector<1x8x16xf32>,
    %57 = vector.extract_strided_slice %42 {offsets = [0, 16], sizes = [9, 16], strides = [1, 1]} : vector<9x48xf32> to vector<9x16xf32>
    %58 = vector.broadcast %5 : vector<1x16xf32> to vector<9x16xf32>
    %59 = arith.addf %57, %58 : vector<9x16xf32>
    %c0_41 = arith.constant 0 : index
    %c0_42 = arith.constant 0 : index
    %c16 = arith.constant 16 : index
    %60 = vector.load %arg8[%c0_41, %c0_42, %c16] : memref<1x9x64xf32, #tpu.memory_space<vmem>>, vector<1x9x16xf32>
    %61 = vector.shape_cast %60 : vector<1x9x16xf32> to vector<9x16xf32>
    %62 = vector.shape_cast %59 : vector<9x16xf32> to vector<1x9x16xf32>
    tpu.vector_store %arg8[%c0_41, %c0_42, %c16], %62 {strides = array<i32>} : memref<1x9x64xf32, #tpu.memory_space<vmem>>, vector<1x9x16xf32>,
    %63 = vector.extract_strided_slice %42 {offsets = [0, 32], sizes = [9, 16], strides = [1, 1]} : vector<9x48xf32> to vector<9x16xf32>
    %64 = vector.broadcast %5 : vector<1x16xf32> to vector<9x16xf32>
    %65 = arith.addf %63, %64 : vector<9x16xf32>
    %c0_43 = arith.constant 0 : index
    %c0_44 = arith.constant 0 : index
    %c32 = arith.constant 32 : index
    %66 = vector.load %arg8[%c0_43, %c0_44, %c32] : memref<1x9x64xf32, #tpu.memory_space<vmem>>, vector<1x9x16xf32>
    %67 = vector.shape_cast %66 : vector<1x9x16xf32> to vector<9x16xf32>
    %68 = vector.shape_cast %65 : vector<9x16xf32> to vector<1x9x16xf32>
    tpu.vector_store %arg8[%c0_43, %c0_44, %c32], %68 {strides = array<i32>} : memref<1x9x64xf32, #tpu.memory_space<vmem>>, vector<1x9x16xf32>,
    %c0_45 = arith.constant 0 : index
    %c0_46 = arith.constant 0 : index
    %c32_47 = arith.constant 32 : index
    %69 = vector.load %arg8[%c0_45, %c0_46, %c32_47] : memref<1x9x64xf32, #tpu.memory_space<vmem>>, vector<1x8x16xf32>
    %70 = vector.shape_cast %69 : vector<1x8x16xf32> to vector<8x16xf32>
    %71 = vector.extract_strided_slice %43 {offsets = [0, 0], sizes = [8, 16], strides = [1, 1]} : vector<8x48xf32> to vector<8x16xf32>
    %72 = arith.addf %70, %71 : vector<8x16xf32>
    %c0_48 = arith.constant 0 : index
    %c0_49 = arith.constant 0 : index
    %c32_50 = arith.constant 32 : index
    %73 = vector.load %arg8[%c0_48, %c0_49, %c32_50] : memref<1x9x64xf32, #tpu.memory_space<vmem>>, vector<1x8x16xf32>
    %74 = vector.shape_cast %73 : vector<1x8x16xf32> to vector<8x16xf32>
    %75 = vector.shape_cast %72 : vector<8x16xf32> to vector<1x8x16xf32>
    tpu.vector_store %arg8[%c0_48, %c0_49, %c32_50], %75 {strides = array<i32>} : memref<1x9x64xf32, #tpu.memory_space<vmem>>, vector<1x8x16xf32>,
    %76 = vector.extract_strided_slice %43 {offsets = [0, 16], sizes = [8, 16], strides = [1, 1]} : vector<8x48xf32> to vector<8x16xf32>
    %77 = vector.broadcast %5 : vector<1x16xf32> to vector<8x16xf32>
    %78 = arith.addf %76, %77 : vector<8x16xf32>
    %c0_51 = arith.constant 0 : index
    %c0_52 = arith.constant 0 : index
    %c48 = arith.constant 48 : index
    %79 = vector.load %arg8[%c0_51, %c0_52, %c48] : memref<1x9x64xf32, #tpu.memory_space<vmem>>, vector<1x8x16xf32>
    %80 = vector.shape_cast %79 : vector<1x8x16xf32> to vector<8x16xf32>
    %81 = vector.shape_cast %78 : vector<8x16xf32> to vector<1x8x16xf32>
    tpu.vector_store %arg8[%c0_51, %c0_52, %c48], %81 {strides = array<i32>} : memref<1x9x64xf32, #tpu.memory_space<vmem>>, vector<1x8x16xf32>,
    %cst_53 = arith.constant 0.000000e+00 : f32
    %82 = vector.broadcast %cst_53 : f32 to vector<1x16xf32>
    %c0_54 = arith.constant 0 : index
    %c8_55 = arith.constant 8 : index
    %c48_56 = arith.constant 48 : index
    %83 = vector.load %arg8[%c0_54, %c8_55, %c48_56] : memref<1x9x64xf32, #tpu.memory_space<vmem>>, vector<1x1x16xf32>
    %84 = vector.shape_cast %83 : vector<1x1x16xf32> to vector<1x16xf32>
    %85 = vector.shape_cast %82 : vector<1x16xf32> to vector<1x1x16xf32>
    tpu.vector_store %arg8[%c0_54, %c8_55, %c48_56], %85 {strides = array<i32>} : memref<1x9x64xf32, #tpu.memory_space<vmem>>, vector<1x1x16xf32>,
    return
  }
  func.func @transform_0(%arg0: i32) -> (i32, i32) {
    %c0_i32 = arith.constant 0 : i32
    %c0_i32_0 = arith.constant 0 : i32
    return %arg0, %c0_i32 : i32, i32
  }
  func.func @transform_1(%arg0: i32) -> (i32, i32) {
    %c0_i32 = arith.constant 0 : i32
    %c0_i32_0 = arith.constant 0 : i32
    %c0_i32_1 = arith.constant 0 : i32
    return %c0_i32, %c0_i32_0 : i32, i32
  }
  func.func @transform_2(%arg0: i32) -> (i32, i32) {
    %c0_i32 = arith.constant 0 : i32
    %c0_i32_0 = arith.constant 0 : i32
    %c0_i32_1 = arith.constant 0 : i32
    return %c0_i32, %c0_i32_0 : i32, i32
  }
  func.func @transform_3(%arg0: i32) -> (i32, i32) {
    %c0_i32 = arith.constant 0 : i32
    %c0_i32_0 = arith.constant 0 : i32
    %c0_i32_1 = arith.constant 0 : i32
    return %c0_i32, %c0_i32_0 : i32, i32
  }
  func.func @transform_4(%arg0: i32) -> (i32, i32) {
    %c0_i32 = arith.constant 0 : i32
    %c0_i32_0 = arith.constant 0 : i32
    %c0_i32_1 = arith.constant 0 : i32
    return %c0_i32, %c0_i32_0 : i32, i32
  }
  func.func @transform_5(%arg0: i32) -> (i32, i32) {
    %c0_i32 = arith.constant 0 : i32
    %c0_i32_0 = arith.constant 0 : i32
    %c0_i32_1 = arith.constant 0 : i32
    return %c0_i32, %c0_i32_0 : i32, i32
  }
  func.func @transform_6(%arg0: i32) -> (i32, i32) {
    %c0_i32 = arith.constant 0 : i32
    %c0_i32_0 = arith.constant 0 : i32
    %c0_i32_1 = arith.constant 0 : i32
    return %c0_i32, %c0_i32_0 : i32, i32
  }
  func.func @transform_7(%arg0: i32) -> (i32, i32, i32) {
    %c0_i32 = arith.constant 0 : i32
    %c0_i32_0 = arith.constant 0 : i32
    %c0_i32_1 = arith.constant 0 : i32
    return %arg0, %c0_i32, %c0_i32_0 : i32, i32, i32
  }
}

</mosaic_0001>

<bundles_post_ra>
// kernel: tpu_custom_call.1
= control target key start
LH: loop header
LB: loop body
LE: loop exit
PB: predicated region body
PF: predicated region fallthrough
CT: control target
= control target key end

     0   :  { %s782_s24 = smov 0   ;;  %s873_s0 = inlined_call_operand.vmem [shape: bf16[16,8], index: 0, kind: input, shape index: {}]   ;;  %s874_s1 = inlined_call_operand.vmem [shape: bf16[8,24], index: 1, kind: input, shape index: {}]   ;;  %s875_s2 = inlined_call_operand.vmem [shape: f32[1,24], index: 2, kind: input, shape index: {}]   ;;  %s876_s3 = inlined_call_operand.vmem [shape: bf16[24,168], index: 3, kind: input, shape index: {}]   ;;  %s877_s4 = inlined_call_operand.vmem [shape: f32[1,56], index: 4, kind: input, shape index: {}]   ;;  %s878_s5 = inlined_call_operand.vmem [shape: bf16[56,48], index: 5, kind: input, shape index: {}]   ;;  %s879_s6 = inlined_call_operand.vmem [shape: f32[1,16], index: 6, kind: input, shape index: {}]   ;;  %s880_s7 = inlined_call_operand.vmem [shape: f32[2,9,64], index: 7, kind: output, shape index: {}]  }
   0x1 LB: > { %s648_s25 = sadd.s32 4294967295, %s732_s24   ;;  %p652_p0 = scmp.ge.s32.totalorder %s732_s24, 1  ;;  %s732_s24 = sphi %s782_s24, %s17_s24  }
   0x2   : > { %p236_p1 = scmp.lt.s32.totalorder %s732_s24, 3 }
   0x4   : > { %p237_p2 = pnand %p652_p0, %p236_p1 }
   0x5   : > { %v277_v0 = vld [vmem:[%s874_s1] sm:$0xf] (!%p237_p2)  ;;  %vm302_vm0 = vcmask (!%p237_p2), 1043456   ;;  %p267_p3 = scmp.lt.s32.totalorder (!%p237_p2), %s648_s25, 1  ;;  %v734_v1 = vmov (!%p237_p2), 0.0   ;;  %vm735_vm1 = vmmov (!%p237_p2), 0   ;;  %v415_v12 = vlaneseq (!%p237_p2) }
   0x6   : > { %240 = sbr.rel (%p237_p2) target bundleno = 931 (0x3a3), region = 48  ;;  %682 = vmatprep.subr.bf16.mxu1 (!%p237_p2), %v734_v1  ;;  %v304_v2 = vsel (!%p237_p2), %vm302_vm0, %v277_v0, 0  ;;  %684 = vmatprep.mubr.msk.bf16.mxu1 (!%p237_p2), %vm735_vm1, %v734_v1  ;;  %v717_v3 = vld [vmem:[%s876_s3] ss:$8 sps:$4 sm:$0xff] (!%p237_p2)   ;;  %v719_v4 = vld [vmem:[%s876_s3 + $0x4] ss:$8 sps:$4 sm:$0xff] (!%p237_p2)  }
   0x7   : > { %683 = vmatpush3.bf16.msra.mxu1 (!%p237_p2), %v304_v2  ;;  %vm298_vm2 = vcmask (!%p237_p2), 64512   ;;  %v281_v6 = vld [vmem:[%s876_s3 + $0x10] sm:$0xff] (!%p237_p2)  ;;  %v736_v10 = vmov (!%p237_p2), 0   ;;  %v282_v11 = vld [vmem:[%s877_s4] sm:$0x1] (!%p237_p2)  ;;  %vm423_vm3 = vcmask (!%p237_p2), 450560  }
   0x8   : > { %373 = vmatprep.subr.bf16.mxu1 (!%p237_p2), %v719_v4  ;;  %v661_v7 = vcombine.high (!%p237_p2), %v281_v6, %v281_v6  ;;  %v660_v8 = vcombine.low (!%p237_p2), %v281_v6, %v281_v6  ;;  %424 = vst.msk [vmem:[#allocation2 + $0x8] sm:$0x1] (!%p237_p2), %vm423_vm3, %v282_v11  ;;  %v416_v13 = vshrl.u32 (!%p237_p2), %v415_v12, 7  ;;  %s737_s17 = smov (!%p237_p2), 56   ;;  %v656_v16 = vld [vmem:[%s875_s2] ss:$0 sm:$0xff] (!%p237_p2) }
   0x9   : > { %vm363_vm4 = vcmask (!%p237_p2), 195584   ;;  %v722_v24 = vld [vmem:[%s878_s5] sm:$0xff] (!%p237_p2)   ;;  %v723_v25 = vld [vmem:[%s878_s5 + $0x8] sm:$0xff] (!%p237_p2)   ;;  %v724_v26 = vld [vmem:[%s878_s5 + $0x10] sm:$0xff] (!%p237_p2)   ;;  %vm421_vm5 = vcmask (!%p237_p2), 457728   ;;  %s738_s30 = smov (!%p237_p2), 16  }
   0xa   : > { %v368_v9 = vsel (!%p237_p2), %vm302_vm0, %v660_v8, 0  ;;  %v417_v14 = vsub.s32 (!%p237_p2), 0, %v416_v13  ;;  %688 = vmatprep.subr.bf16.mxu0 (!%p237_p2), %v722_v24  ;;  %v725_v27 = vld [vmem:[%s878_s5 + $0x18] ss:$0 sps:$4 sm:$0xff] (!%p237_p2)   ;;  %s739_s8 = smov (!%p237_p2), 72   ;;  %s740_s11 = smov (!%p237_p2), 32  }
   0xb   : > { %689 = vmatpush3.bf16.msra.mxu0 (!%p237_p2), %v722_v24  ;;  %v482_v29 = vsel (!%p237_p2), %vm302_vm0, %v725_v27, 0  ;;  %v670_v36 = vld [vmem:[%s879_s6] ss:$0 sm:$0xff] (!%p237_p2)  ;;  %vm432_vm6 = vcmask (!%p237_p2), 130048   ;;  %vm541_vm7 = vcmask (!%p237_p2), 122880   ;;  %vm546_vm8 = vcmask (!%p237_p2), 1046528  }
   0xc   : > { %v418_v15 = vrot.slane (!%p237_p2), %v282_v11, %v417_v14  ;;  %690 = vmatprep.subr.bf16.mxu0 (!%p237_p2), %v723_v25  ;;  %vm560_vm9 = vcmask (!%p237_p2), 261248   ;;  %vm562_vm10 = vcmask (!%p237_p2), 254080   ;;  %vm569_vm11 = vcmask (!%p237_p2), 392448  }
   0xd   : > { %s882_s25 = smov (!%p267_p3, %s648_s25), 1  ;;  %vm571_vm12 = vcmask 385280   ;;  %vm590_vm13 = vcmask 516480   ;;  %vm588_vm14 = vcmask 523649  }
   0xe   : > { %s653_s9 = sshll.u32 %s882_s25, 2  ;;  %437 = vrot.lane.b32.xlu0 %v418_v15, %s737_s17 }
   0xf   : > { %s270_s12 = scalar_lea.vmem %s873_s0, %s653_s9  ;;  %691 = vmatpush3.bf16.msra.mxu0 %v723_v25 }
  0x10   : > { %v291_v5 = vld [vmem:[%s270_s12] sm:$0xf]  ;;  %692 = vmatprep.subr.bf16.mxu0 %v724_v26  ;;  %s673_s12 = sshll.u32 %s882_s25, 4  ;;  %s741_s25 = smov 96  }
  0x11   : > { %685 = vmatmul.mubr.msk.bf16.vlgmr.msra.gmra.mrb[0].mxu1 %vm298_vm2, %v291_v5  ;;  %s847_s15 = scalar_lea.vmem %s880_s7, %s673_s12 }
  0x12   : > { %374 = vmatpush1.bf16.msra.mxu1 %v717_v3  ;;  %405 = vmatprep.mubr.bf16.mxu1 %v736_v10 }
  0x13   : > { %662 = vmatprep.subr.msk.bf16.mxu1 %vm302_vm0, %v661_v7  ;;  %693 = vmatpush3.bf16.msra.mxu0 %v724_v26 }
  0x14   : > { %700 = vmatprep.subr.msk.bf16.mxu0 %vm302_vm0, %v725_v27 }
  0x16   : > { %376 = vmatpush1.bf16.msra.mxu1 %v368_v9 }
  0x17   : > { %695 = vmatpush3.bf16.msra.mxu0 %v482_v29 }
  0x80   : > { %v438_v30 = vpop.permute.xlu0 %437 }
  0xe4   : > { %v340_v17 = vpop.f32.mrb[0].mxu1 }
  0xe5   : > { %v341_v18 = vadd.f32 %v656_v16, %v340_v17  ;;  %v686_v19 = vpop.f32.mrb[1].mxu1 }
  0xe6   : > { %v343_v20 = vpop.f32.mrb[2].mxu1 }
  0xe7   : > { %v346_v21 = vmax.f32 %v341_v18, 0.0  ;;  %v687_v22 = vpop.f32.mrb[3].mxu1 }
  0xe9   : > { %v347_v23 = vpack.c.bf16 %v346_v21, %v346_v21 }
  0xeb   : > { %663 = vmatmul.mubr.msk.bf16.vlgmr.msra.gmra.mrb[4].mxu1 %vm363_vm4, %v347_v23 }
 0x1be   : > { %v407_v28 = vpop.f32.mrb[4].mxu1 }
 0x1bf   : > { %v420_v31 = vadd.f32 %v418_v15, %v407_v28  ;;  %428 = vrot.lane.b32.xlu0 %v407_v28, %s738_s30  ;;  %v409_v32 = vpop.f32.mrb[5].mxu1  ;;  %v440_v35 = vadd.f32 %v438_v30, %v407_v28 }
 0x1c0   : > { %430 = vrot.lane.b32.xlu1 %v409_v32, %s738_s30  ;;  %v411_v33 = vpop.f32.mrb[6].mxu1 }
 0x1c1   : > { %422 = vst.msk [vmem:[#allocation2] sm:$0xff] %vm421_vm5, %v420_v31  ;;  %v412_v34 = vpop.f32.mrb[7].mxu1 }
 0x1c3   : > { %555 = vrot.lane.b32.xlu0 %v670_v36, %s738_s30 }
 0x1c4   : > { %442 = vrot.lane.b32.xlu1 %v440_v35, %s739_s8 }
 0x1c7   : > { %564 = vrot.lane.b32.xlu0 %v670_v36, %s740_s11 }
 0x1c8   : > { %v425_v39 = vld [vmem:[#allocation2 + $0x1] sm:$0xff] }
 0x231   : > { %v429_v37 = vpop.permute.xlu0 %428 }
 0x232   : > { %v431_v38 = vpop.permute.xlu1 %430 }
 0x233   : > { %v433_v40 = vsel %vm432_vm6, %v429_v37, %v431_v38 }
 0x234   : > { %v435_v41 = vadd.f32 %v433_v40, %v425_v39 }
 0x235   : > { %v556_v55 = vpop.permute.xlu0 %555 }
 0x236   : > { %436 = vst.msk [vmem:[#allocation2 + $0x1] sm:$0xff] %vm421_vm5, %v435_v41  ;;  %v443_v42 = vpop.permute.xlu1 %442 }
 0x237   : > { %445 = vst.msk [vmem:[#allocation2 + $0x9] sm:$0xff] %vm421_vm5, %v443_v42 }
 0x239   : > { %v565_v63 = vpop.permute.xlu0 %564 }
 0x23d   : > { %v446_v43 = vld [vmem:[#allocation2] sm:$0xff] }
 0x23e   : > { %v447_v44 = vld [vmem:[#allocation2 + $0x8] sm:$0xff]  ;;  %v449_v45 = vmax.f32 %v446_v43, 0.0  ;;  %v448_v46 = vld [vmem:[#allocation2 + $0x10] sm:$0x1] }
 0x23f   : > { %v450_v47 = vmax.f32 %v447_v44, 0.0  ;;  %v451_v48 = vmax.f32 %v448_v46, 0.0 }
 0x241   : > { %v452_v49 = vpack.c.bf16 %v450_v47, %v449_v45  ;;  %v453_v50 = vpack.c.bf16 %v451_v48, %v451_v48 }
 0x243   : > { %696 = vmatprep.mubr.msk.bf16.mxu0 %vm421_vm5, %v452_v49 }
 0x244   : > { %697 = vmatmul.mubr.msk.bf16.vlgmr.msra.gmra.mrb[0].mxu0 %vm421_vm5, %v453_v50 }
 0x317   : > { %v698_v51 = vpop.f32.mrb[0].mxu0 }
 0x318   : > { %v518_v52 = vpop.f32.mrb[1].mxu0  ;;  %v548_v57 = vrot.slane %v698_v51, 1  ;;  %v579_v62 = vadd.f32 %v698_v51, %v556_v55 }
 0x319   : > { %v538_v53 = vadd.f32 %v670_v36, %v518_v52  ;;  %v699_v54 = vpop.f32.mrb[2].mxu0  ;;  %v558_v4 = vadd.f32 %v556_v55, %v518_v52  ;;  %v567_v5 = vadd.f32 %v565_v63, %v518_v52 }
 0x31a   : > { %v521_v56 = vpop.f32.mrb[3].mxu0 }
 0x31b   : > { %540 = vst.msk [vmem:[%s847_s15] sm:$0xff] %vm432_vm6, %v538_v53  ;;  %v539_v58 = vadd.f32 %v670_v36, %v521_v56  ;;  %v547_v59 = vrot.slane %v521_v56, 1  ;;  %v559_v60 = vadd.f32 %v556_v55, %v521_v56  ;;  %v568_v6 = vadd.f32 %v565_v63, %v521_v56 }
 0x31d   : > { %542 = vst.msk [vmem:[%s847_s15 + $0x8] sm:$0x1] %vm541_vm7, %v539_v58  ;;  %582 = vrot.lane.b32.xlu0 %v559_v60, %s740_s11  ;;  %v549_v61 = vsel %vm546_vm8, %v547_v59, %v548_v57 }
 0x31e   : > { %550 = vrot.lane.b32.xlu1 %v549_v61, %s741_s25 }
 0x322   : > { %574 = vrot.lane.b32.xlu1 %v549_v61, %s740_s11 }
 0x324   : > { %v543_v2 = vld [vmem:[%s847_s15 + $0x1] sm:$0xff] }
 0x326   : > { %584 = vrot.lane.b32.xlu1 %v579_v62, %s740_s11 }
 0x38f   : > { %v583_v10 = vpop.permute.xlu0 %582 }
 0x390   : > { %v551_v0 = vpop.permute.xlu1 %550 }
 0x391   : > { %v553_v3 = vadd.f32 %v551_v0, %v543_v2 }
 0x393   : > { %554 = vst.msk [vmem:[%s847_s15 + $0x1] sm:$0xff] %vm432_vm6, %v553_v3 }
 0x394   : > { %561 = vst.msk [vmem:[%s847_s15] sm:$0xff] %vm560_vm9, %v558_v4  ;;  %v575_v7 = vpop.permute.xlu1 %574 }
 0x395   : > { %563 = vst.msk [vmem:[%s847_s15 + $0x8] sm:$0x1] %vm562_vm10, %v559_v60 }
 0x396   : > { %570 = vst.msk [vmem:[%s847_s15] sm:$0xff] %vm569_vm11, %v567_v5 }
 0x397   : > { %572 = vst.msk [vmem:[%s847_s15 + $0x8] sm:$0x1] %vm571_vm12, %v568_v6 }
 0x398   : > { %592 = vst.msk [vmem:[%s847_s15 + $0x8] sm:$0x1] %vm590_vm13, %v734_v1  ;;  %v585_v11 = vpop.permute.xlu1 %584 }
 0x39d   : > { %v573_v8 = vld [vmem:[%s847_s15] sm:$0xff] }
 0x39e   : > { %v577_v9 = vadd.f32 %v575_v7, %v573_v8 }
 0x3a0   : > { %578 = vst.msk [vmem:[%s847_s15] sm:$0xff] %vm569_vm11, %v577_v9 }
 0x3a1   : > { %589 = vst.msk [vmem:[%s847_s15 - $0x1] sm:$0xfe] %vm588_vm14, %v583_v10 }
 0x3a2   : > { %591 = vst.msk [vmem:[%s847_s15 + $0x7] sm:$0x1] %vm590_vm13, %v585_v11 }
 0x3a3 PF: > { %s17_s24 = sadd.s32 1, %s732_s24  }
 0x3a4   : > { %p14_p4 = scmp.ge.s32.totalorder %s17_s24, 4  }
 0x3a6   :  { %16 = sbr.rel (!%p14_p4) target bundleno = 1 (0x1), region = 78 }

</bundles_post_ra>
